<compile_context>
chip_gen: v7x
topology: tpu7x:2x2x1
jax: 0.10.0
libtpu: 0.0.40
codegen_flags: <defaults>
</compile_context>

<pallas_src>
import jax
import jax.numpy as jnp
from jax.experimental import pallas as pl
from jax.experimental.pallas import tpu as pltpu


# ----------------------------- kernels ------------------------------------ #

def _classifier_fused_kernel(x_ref, w_ref, b_ref, o_ref):
    """Single-shot path: whole (padded) F in one block per batch tile.

    x_ref: (tm, F_pad) f32, w_ref: (F_pad, c_pad) bf16, b_ref: (1, c_pad) f32,
    o_ref: (tm, c_pad) f32.
    """
    x = x_ref[...].astype(jnp.bfloat16)                 # VPU cast, hidden under DMA
    logits = jnp.dot(x, w_ref[...], preferred_element_type=jnp.float32)
    logits = logits + b_ref[...]                        # padded lanes hold -1e30
    m = jnp.max(logits, axis=-1, keepdims=True)
    e = jnp.exp(logits - m)                             # padded lanes -> 0
    denom = jnp.sum(e, axis=-1, keepdims=True)
    o_ref[...] = e * pl.reciprocal(denom, approx=True)  # ~1e-3 normalization error


def _classifier_ktiled_kernel(x_ref, w_ref, b_ref, o_ref, acc_ref):
    """K-tiled path for large F: f32 accumulator, bias folded into k==0 init.

    x_ref: (tm, tk) f32, w_ref: (tk, c_pad) bf16, b_ref: (1, c_pad) f32,
    o_ref: (tm, c_pad) f32, acc_ref: (tm, c_pad) f32 scratch.
    """
    k = pl.program_id(1)

    @pl.when(k == 0)
    def _():
        acc_ref[...] = jnp.broadcast_to(b_ref[...], acc_ref.shape)

    acc_ref[...] += jnp.dot(x_ref[...].astype(jnp.bfloat16), w_ref[...],
                            preferred_element_type=jnp.float32)

    @pl.when(k == pl.num_programs(1) - 1)
    def _():
        logits = acc_ref[...]
        m = jnp.max(logits, axis=-1, keepdims=True)
        e = jnp.exp(logits - m)
        denom = jnp.sum(e, axis=-1, keepdims=True)
        o_ref[...] = e * pl.reciprocal(denom, approx=True)


# --------------------------- helpers / params ------------------------------ #

def _round_up(x, m):
    return ((x + m - 1) // m) * m


def _pick_tm(batch):
    """Returns (tm, padded_batch).  tm is a multiple of 8 (sublane-full f32)."""
    b8 = _round_up(max(batch, 8), 8)
    if b8 <= 256:
        return b8, b8                       # one tile is fine at this size
    # Big batch: >=2 tiles so the "parallel" axis can shard across v7x's two
    # TensorCores, while tiles stay large enough to amortize the weight stream.
    tm = 256 if b8 < 1024 else 512
    return tm, _round_up(b8, tm)


def prepare_classifier_params(weight, bias, *, tk_target=2048,
                              single_shot_max_bytes=8 * 1024 * 1024):
    """One-time, init-time parameter prep (NOT the per-call hot path).

    weight: (C, F) as stored by torch.nn.Linear; bias: (C,).
    Produces a pre-transposed, zero-padded bf16 weight (F_pad, c_pad) and an
    f32 bias row (1, c_pad) whose padded class lanes hold -1e30 (softmax mask;
    correct only while the accumulator/logits stay f32).
    """
    C, F = weight.shape
    c_pad = _round_up(C, 128)
    if F * c_pad * 2 <= single_shot_max_bytes:
        tk = _round_up(F, 128)              # single-shot: one K block = all of F
    else:
        tk = min(_round_up(tk_target, 128), _round_up(F, 128))
    f_pad = _round_up(F, tk)                # always tileable, no giant fallback

    w_fc = jnp.zeros((f_pad, c_pad), jnp.bfloat16)
    w_fc = w_fc.at[:F, :C].set(weight.T.astype(jnp.bfloat16))
    b_pad = jnp.full((1, c_pad), -1e30, jnp.float32)
    b_pad = b_pad.at[0, :C].set(bias.astype(jnp.float32))
    return dict(w=w_fc, b=b_pad, F=F, f_pad=f_pad, tk=tk, C=C, c_pad=c_pad)


# ------------------------------ forward ------------------------------------ #

def imgnet_classifier_forward(dat, params):
    """dat: (B, 3, R, R) NCHW float; params from prepare_classifier_params."""
    F, f_pad, tk = params["F"], params["f_pad"], params["tk"]
    C, c_pad = params["C"], params["c_pad"]
    w_fc, b_pad = params["w"], params["b"]

    B = dat.shape[0]
    x = dat.reshape(B, -1).astype(jnp.float32)   # == torch .view(-1, 3*R*R)
    assert x.shape[1] == F

    tm, b_padded = _pick_tm(B)
    if b_padded != B or f_pad != F:
        x = jnp.pad(x, ((0, b_padded - B), (0, f_pad - F)))

    m_tiles = b_padded // tm
    num_k = f_pad // tk

    # Explicit VMEM budget (double-buffered x / w / out + f32 accumulator),
    # capped below v7x's 64 MiB physical VMEM.
    vmem_needed = (2 * tm * tk * 4          # f32 activation blocks
                   + 2 * tk * c_pad * 2     # bf16 weight blocks
                   + 2 * c_pad * 4          # bias
                   + tm * c_pad * 4         # accumulator scratch (k-tiled path)
                   + 2 * tm * c_pad * 4)    # f32 output blocks
    vmem_limit = int(min(48 * 1024 * 1024,
                         max(32 * 1024 * 1024, 2 * vmem_needed)))

    if num_k == 1:
        # Small-F fast path: no K axis, no scratch, no pl.when branches.
        out_pad = pl.pallas_call(
            _classifier_fused_kernel,
            out_shape=jax.ShapeDtypeStruct((b_padded, c_pad), jnp.float32),
            grid=(m_tiles,),
            in_specs=[
                pl.BlockSpec((tm, f_pad), lambda i: (i, 0)),      # activations
                pl.BlockSpec((f_pad, c_pad), lambda i: (0, 0)),   # whole weight
                pl.BlockSpec((1, c_pad), lambda i: (0, 0)),       # bias
            ],
            out_specs=pl.BlockSpec((tm, c_pad), lambda i: (i, 0)),
            compiler_params=pltpu.CompilerParams(
                dimension_semantics=("parallel",),
                vmem_limit_bytes=vmem_limit,
            ),
        )(x, w_fc, b_pad)
    else:
        # Large-F path: K tiles streamed, f32 accumulator held across K.
        out_pad = pl.pallas_call(
            _classifier_ktiled_kernel,
            out_shape=jax.ShapeDtypeStruct((b_padded, c_pad), jnp.float32),
            grid=(m_tiles, num_k),
            in_specs=[
                pl.BlockSpec((tm, tk), lambda i, k: (i, k)),      # activations
                pl.BlockSpec((tk, c_pad), lambda i, k: (k, 0)),   # weight tiles
                pl.BlockSpec((1, c_pad), lambda i, k: (0, 0)),    # bias
            ],
            out_specs=pl.BlockSpec((tm, c_pad), lambda i, k: (i, 0)),
            scratch_shapes=[pltpu.VMEM((tm, c_pad), jnp.float32)],
            compiler_params=pltpu.CompilerParams(
                dimension_semantics=("parallel", "arbitrary"),
                vmem_limit_bytes=vmem_limit,
            ),
        )(x, w_fc, b_pad)

    return out_pad[:B, :C]


def _reference_forward(dat, weight, bias):
    x = dat.reshape(dat.shape[0], -1).astype(jnp.float32)
    logits = x @ weight.T.astype(jnp.float32) + bias.astype(jnp.float32)
    return jax.nn.softmax(logits, axis=-1)


if __name__ == "__main__":
    # CIFAR-like config: resolution=32, 3 channels, 10 classes, batch=2.
    B, Cin, R, num_classes = 2, 3, 32, 10
    in_features = Cin * R * R  # 3072, matches torch.nn.Linear(32*32*3, num_classes)

    key = jax.random.PRNGKey(0)
    k_x, k_w, k_b = jax.random.split(key, 3)

    dat = jax.random.normal(k_x, (B, Cin, R, R), dtype=jnp.float32)
    bound = 1.0 / (in_features ** 0.5)
    weight = jax.random.uniform(k_w, (num_classes, in_features),
                                minval=-bound, maxval=bound, dtype=jnp.float32)
    bias = jax.random.uniform(k_b, (num_classes,),
                              minval=-bound, maxval=bound, dtype=jnp.float32)

    ref = _reference_forward(dat, weight, bias)

    # --- Fast path: single-shot fused kernel (CIFAR-size F fits in VMEM). ---
    params = prepare_classifier_params(weight, bias)
    jax.block_until_ready((params["w"], params["b"]))
    out = jax.block_until_ready(imgnet_classifier_forward(dat, params))

    assert out.shape == (B, num_classes)
    # bf16 matmul inputs + approx reciprocal -> relaxed (still tight) tolerances.
    assert jnp.allclose(out, ref, atol=2e-2), float(jnp.max(jnp.abs(out - ref)))
    assert jnp.allclose(jnp.sum(out, axis=-1), 1.0, atol=5e-3)
    assert jnp.all(jnp.argmax(out, axis=-1) == jnp.argmax(ref, axis=-1))

    # --- K-tiled path (used for ImageNet-scale F), forced here to verify it. ---
    params_kt = prepare_classifier_params(weight, bias, tk_target=1024,
                                          single_shot_max_bytes=0)
    jax.block_until_ready((params_kt["w"], params_kt["b"]))
    out_kt = jax.block_until_ready(imgnet_classifier_forward(dat, params_kt))

    assert out_kt.shape == (B, num_classes)
    assert jnp.allclose(out_kt, ref, atol=2e-2), float(jnp.max(jnp.abs(out_kt - ref)))
    assert jnp.all(jnp.argmax(out_kt, axis=-1) == jnp.argmax(ref, axis=-1))

    # TODO(synk): the hidden_size>0 branches (VQ-VAE / VAE / AAE encoders) require
    # an external autoencoder module and are not part of this synthetic kernel.
    print("KERNEL_OK")
</pallas_src>

<mosaic_0001>
module attributes {stable_mosaic.version = 11 : i64} {
  func.func @_classifier_fused_kernel(%arg0: i32, %arg1: memref<8x3072xf32, #tpu.memory_space<vmem>>, %arg2: memref<3072x128xbf16, #tpu.memory_space<vmem>>, %arg3: memref<1x128xf32, #tpu.memory_space<vmem>>, %arg4: memref<8x128xf32, #tpu.memory_space<vmem>>) attributes {dimension_semantics = [#tpu.dimension_semantics<parallel>], iteration_bounds = array<i64: 1>, scalar_prefetch = 0 : i64, scratch_operands = 0 : i64, tpu.core_type = #tpu.core_type<tc>, window_params = [{transform_indices = @transform_0, window_bounds = array<i64: 8, 3072>}, {pipeline_mode = #tpu.pipeline_mode<synchronous>, transform_indices = @transform_1, window_bounds = array<i64: 3072, 128>}, {pipeline_mode = #tpu.pipeline_mode<synchronous>, transform_indices = @transform_2, window_bounds = array<i64: 1, 128>}, {transform_indices = @transform_3, window_bounds = array<i64: 8, 128>}]} {
    %c0 = arith.constant 0 : index
    %c0_0 = arith.constant 0 : index
    %0 = vector.load %arg1[%c0, %c0_0] : memref<8x3072xf32, #tpu.memory_space<vmem>>, vector<8x3072xf32>
    %1 = arith.truncf %0 : vector<8x3072xf32> to vector<8x3072xbf16>
    %c0_1 = arith.constant 0 : index
    %c0_2 = arith.constant 0 : index
    %2 = vector.load %arg2[%c0_1, %c0_2] : memref<3072x128xbf16, #tpu.memory_space<vmem>>, vector<3072x128xbf16>
    %cst = arith.constant dense<0.000000e+00> : vector<8x128xf32>
    %3 = tpu.matmul %1, %2, %cst {dimension_numbers = #tpu.dot_dimension_numbers<[1], [0], [0], [1], [0, 0, 1, 1], [], []>} : vector<8x3072xbf16>, vector<3072x128xbf16>, vector<8x128xf32> -> vector<8x128xf32>
    %c0_3 = arith.constant 0 : index
    %c0_4 = arith.constant 0 : index
    %4 = vector.load %arg3[%c0_3, %c0_4] : memref<1x128xf32, #tpu.memory_space<vmem>>, vector<1x128xf32>
    %5 = vector.broadcast %4 : vector<1x128xf32> to vector<8x128xf32>
    %6 = arith.addf %3, %5 : vector<8x128xf32>
    %cst_5 = arith.constant dense<0xFF800000> : vector<8xf32>
    %7 = vector.multi_reduction <maximumf>, %6, %cst_5 [1] : vector<8x128xf32> to vector<8xf32>
    %8 = vector.shape_cast %7 : vector<8xf32> to vector<8x1xf32>
    %9 = vector.broadcast %8 : vector<8x1xf32> to vector<8x128xf32>
    %10 = arith.subf %6, %9 : vector<8x128xf32>
    %11 = math.exp %10 : vector<8x128xf32>
    %cst_6 = arith.constant dense<0.000000e+00> : vector<8xf32>
    %12 = vector.multi_reduction <add>, %11, %cst_6 [1] : vector<8x128xf32> to vector<8xf32>
    %13 = vector.shape_cast %12 : vector<8xf32> to vector<8x1xf32>
    %14 = tpu.reciprocal %13 {approx = true} : vector<8x1xf32> -> vector<8x1xf32>
    %15 = vector.broadcast %14 : vector<8x1xf32> to vector<8x128xf32>
    %16 = arith.mulf %11, %15 : vector<8x128xf32>
    %c0_7 = arith.constant 0 : index
    %c0_8 = arith.constant 0 : index
    %17 = vector.load %arg4[%c0_7, %c0_8] : memref<8x128xf32, #tpu.memory_space<vmem>>, vector<8x128xf32>
    tpu.vector_store %arg4[%c0_7, %c0_8], %16 {strides = array<i32>} : memref<8x128xf32, #tpu.memory_space<vmem>>, vector<8x128xf32>,
    return
  }
  func.func @transform_0(%arg0: i32) -> (i32, i32) {
    %c0_i32 = arith.constant 0 : i32
    %c0_i32_0 = arith.constant 0 : i32
    return %arg0, %c0_i32 : i32, i32
  }
  func.func @transform_1(%arg0: i32) -> (i32, i32) {
    %c0_i32 = arith.constant 0 : i32
    %c0_i32_0 = arith.constant 0 : i32
    %c0_i32_1 = arith.constant 0 : i32
    return %c0_i32, %c0_i32_0 : i32, i32
  }
  func.func @transform_2(%arg0: i32) -> (i32, i32) {
    %c0_i32 = arith.constant 0 : i32
    %c0_i32_0 = arith.constant 0 : i32
    %c0_i32_1 = arith.constant 0 : i32
    return %c0_i32, %c0_i32_0 : i32, i32
  }
  func.func @transform_3(%arg0: i32) -> (i32, i32) {
    %c0_i32 = arith.constant 0 : i32
    %c0_i32_0 = arith.constant 0 : i32
    return %arg0, %c0_i32 : i32, i32
  }
}

</mosaic_0001>

<bundles_post_ra>
// kernel: tpu_custom_call.1
= control target key start
LH: loop header
LB: loop body
LE: loop exit
PB: predicated region body
PF: predicated region fallthrough
CT: control target
= control target key end

     0   :  { %8 = vsyncpa [#allocation3], 0  ;;  %s2940_s0 = inlined_call_operand.hbm [shape: f32[8,3072], index: 0, kind: input, shape index: {}]   ;;  %s2941_s1 = inlined_call_operand.hbm [shape: bf16[3072,128], index: 1, kind: input, shape index: {}]   ;;  %s2942_s2 = inlined_call_operand.vmem [shape: f32[1,128], index: 2, kind: input, shape index: {}]   ;;  %s2943_s3 = inlined_call_operand.hbm [shape: f32[8,128], index: 3, kind: output, shape index: {}]  }
   0x1   :  { %9 = vsyncpa [#allocation6], 0 }
   0x2   :  { %10 = vsyncpa [#allocation4], 0  ;;  %s2869_s12 = smov [#allocation2]   ;;  %s2870_s14 = smov [#allocation5]  }
   0x3   :  { %s17_s13 = sshll.u32 %s2869_s12, 4  ;;  %s26_s15 = sshll.u32 %s2870_s14, 4  ;;  %s18_s13 = int_to_ptr.vmem [resolvable:$true] %s17_s13  ;;  %s2894_s15 = int_to_ptr.vmem [resolvable:$true] %s26_s15 }
   0x4   :  { %s2797_s18 = scalar_lea.hbm %s2940_s0, 3072 }
   0x5   :  { %p2798_p0 = scmp.ne.s32.totalorder %s2940_s0, %s2797_s18  ;;  %p2801_p1 = scmp.lt.u32.totalorder %s2797_s18, %s2940_s0 }
   0x7   :  { %p2803_p2 = pnand %p2801_p1, %p2798_p0 }
   0x9   :  { %2806 = shalt.err (!%p2803_p2)
}
   0xa   :  { %s2807_s23 = scalar_lea.vmem %s18_s13, 3072  ;;  %p2812_p4 = scmp.lt.s32.totalorder %s18_s13, %s18_s13 }
   0xb   :  { %p2808_p3 = scmp.ne.s32.totalorder %s18_s13, %s2807_s23  ;;  %p2813_p5 = scmp.lt.s32.totalorder %s2807_s23, %s2807_s23 }
   0xd   :  { %p2814_p6 = por %p2813_p5, %p2812_p4 }
   0xf   :  { %p2815_p7 = pnand %p2814_p6, %p2808_p3 }
  0x11   :  { %2818 = shalt.err (!%p2815_p7)
}
  0x12   :  { %20 = dma.hbm_to_vmem [thread:$0]  %s2940_s0, 3072, %s18_s13, [#allocation3]  }
  0x13   :  { %s2819_s28 = scalar_lea.hbm %s2941_s1, 24576 }
  0x14   :  { %p2820_p8 = scmp.ne.s32.totalorder %s2941_s1, %s2819_s28  ;;  %p2823_p9 = scmp.lt.u32.totalorder %s2819_s28, %s2941_s1 }
  0x16   :  { %p2825_p10 = pnand %p2823_p9, %p2820_p8 }
  0x18   :  { %2828 = shalt.err (!%p2825_p10)
}
  0x19   :  { %s2829_s6 = scalar_lea.vmem %s2894_s15, 24576  ;;  %p2834_p12 = scmp.lt.s32.totalorder %s2894_s15, %s2894_s15 }
  0x1a   :  { %p2830_p11 = scmp.ne.s32.totalorder %s2894_s15, %s2829_s6  ;;  %p2835_p13 = scmp.lt.s32.totalorder %s2829_s6, %s2829_s6 }
  0x1c   :  { %p2836_p0 = por %p2835_p13, %p2834_p12 }
  0x1e   :  { %p2837_p1 = pnand %p2836_p0, %p2830_p11 }
  0x20   :  { %2840 = shalt.err (!%p2837_p1)
}
  0x21   :  { %s2871_s0 = smov 64   ;;  %s2872_s7 = smov 4  }
  0x22   :  { %32 = dma.hbm_to_vmem [thread:$0]  %s2941_s1, 24576, %s2894_s15, [#allocation6], %s2871_s0, %s2871_s0, %s2872_s7  }
  0x23   :  { %2863 = dma.done.wait [#allocation3], 3072  }
  0x24   :  { %2864 = vsyncadd [#allocation3], 4294964224 }
  0x25   :  { %2865 = dma.done.wait [#allocation6], 24576  }
  0x26   :  { %2866 = vsyncadd [#allocation6], 4294942720  ;;  %v2601_v0 = vld [vmem:[#allocation5 + $0x40] sm:$0xff]   ;;  %v2605_v4 = vld [vmem:[#allocation5 + $0x48] sm:$0xff]  }
  0x27   :  { %v2602_v1 = vld [vmem:[#allocation5 + $0xc0] sm:$0xff]   ;;  %2332 = vmatprep.subr.bf16.mxu0 %v2601_v0  ;;  %v2606_v5 = vld [vmem:[#allocation5 + $0xc8] sm:$0xff]   ;;  %v2609_v8 = vld [vmem:[#allocation5 + $0x50] sm:$0xff]  }
  0x28   :  { %v2603_v2 = vld [vmem:[#allocation5] sm:$0xff]   ;;  %2354 = vmatprep.subr.bf16.mxu1 %v2602_v1  ;;  %v2607_v6 = vld [vmem:[#allocation5 + $0x8] sm:$0xff]   ;;  %v2610_v9 = vld [vmem:[#allocation5 + $0xd0] sm:$0xff]  }
  0x29   :  { %v2604_v3 = vld [vmem:[#allocation5 + $0x80] sm:$0xff]   ;;  %2333 = vmatpush3.bf16.msra.mxu0 %v2603_v2  ;;  %v2608_v7 = vld [vmem:[#allocation5 + $0x88] sm:$0xff]   ;;  %v2611_v10 = vld [vmem:[#allocation5 + $0x10] sm:$0xff]  }
  0x2a   :  { %2355 = vmatpush3.bf16.msra.mxu1 %v2604_v3  ;;  %2334 = vmatprep.subr.bf16.mxu0 %v2605_v4  ;;  %v2612_v11 = vld [vmem:[#allocation5 + $0x90] sm:$0xff]   ;;  %v2613_v12 = vld [vmem:[#allocation5 + $0x58] sm:$0xff]   ;;  %v2617_v16 = vld [vmem:[#allocation5 + $0x60] sm:$0xff]  }
  0x2b   :  { %2356 = vmatprep.subr.bf16.mxu1 %v2606_v5  ;;  %v2614_v13 = vld [vmem:[#allocation5 + $0xd8] sm:$0xff]   ;;  %v2618_v17 = vld [vmem:[#allocation5 + $0xe0] sm:$0xff]   ;;  %v2621_v20 = vld [vmem:[#allocation5 + $0x68] sm:$0xff]  }
  0x2c   :  { %v2615_v14 = vld [vmem:[#allocation5 + $0x18] sm:$0xff]   ;;  %v2619_v18 = vld [vmem:[#allocation5 + $0x20] sm:$0xff]   ;;  %v2622_v21 = vld [vmem:[#allocation5 + $0xe8] sm:$0xff]  }
  0x2d   :  { %2335 = vmatpush3.bf16.msra.mxu0 %v2607_v6  ;;  %v2616_v15 = vld [vmem:[#allocation5 + $0x98] sm:$0xff]   ;;  %v2620_v19 = vld [vmem:[#allocation5 + $0xa0] sm:$0xff]   ;;  %v2623_v22 = vld [vmem:[#allocation5 + $0x28] sm:$0xff]  }
  0x2e   :  { %2357 = vmatpush3.bf16.msra.mxu1 %v2608_v7  ;;  %2336 = vmatprep.subr.bf16.mxu0 %v2609_v8  ;;  %v2624_v23 = vld [vmem:[#allocation5 + $0xa8] sm:$0xff]   ;;  %v2625_v24 = vld [vmem:[#allocation5 + $0x70] sm:$0xff]   ;;  %v2629_v28 = vld [vmem:[#allocation5 + $0x78] sm:$0xff]  }
  0x2f   :  { %2358 = vmatprep.subr.bf16.mxu1 %v2610_v9  ;;  %v2626_v25 = vld [vmem:[#allocation5 + $0xf0] sm:$0xff]   ;;  %v2630_v29 = vld [vmem:[#allocation5 + $0xf8] sm:$0xff]   ;;  %v43_v32 = vld [vmem:[#allocation2 + $0x8] sm:$0xff] }
  0x30   :  { %v2627_v26 = vld [vmem:[#allocation5 + $0x30] sm:$0xff]   ;;  %v2631_v30 = vld [vmem:[#allocation5 + $0x38] sm:$0xff]   ;;  %v42_v34 = vld [vmem:[#allocation2] sm:$0xff]  ;;  %v67_v35 = vpack.c.bf16 %v43_v32, %v43_v32 }
  0x31   :  { %2337 = vmatpush3.bf16.msra.mxu0 %v2611_v10  ;;  %v2628_v27 = vld [vmem:[#allocation5 + $0xb0] sm:$0xff]   ;;  %v2632_v31 = vld [vmem:[#allocation5 + $0xb8] sm:$0xff]   ;;  %v66_v37 = vpack.c.bf16 %v42_v34, %v42_v34  ;;  %v2633_v40 = vld [vmem:[#allocation5 + $0x140] sm:$0xff]  }
  0x32   :  { %2359 = vmatpush3.bf16.msra.mxu1 %v2612_v11  ;;  %2338 = vmatprep.subr.bf16.mxu0 %v2613_v12  ;;  %v45_v33 = vld [vmem:[#allocation2 + $0x18] sm:$0xff]  ;;  %v44_v38 = vld [vmem:[#allocation2 + $0x10] sm:$0xff]  ;;  %v2634_v41 = vld [vmem:[#allocation5 + $0x1c0] sm:$0xff]  }
  0x33   :  { %2360 = vmatprep.subr.bf16.mxu1 %v2614_v13  ;;  %v69_v36 = vpack.c.bf16 %v45_v33, %v45_v33  ;;  %v68_v39 = vpack.c.bf16 %v44_v38, %v44_v38  ;;  %1665 = vmatprep.mubr.bf16.mxu0 %v67_v35  ;;  %v2635_v42 = vld [vmem:[#allocation5 + $0x100] sm:$0xff]   ;;  %v2637_v44 = vld [vmem:[#allocation5 + $0x148] sm:$0xff]   ;;  %v2641_v48 = vld [vmem:[#allocation5 + $0x150] sm:$0xff]  }
  0x34   :  { %v2636_v43 = vld [vmem:[#allocation5 + $0x180] sm:$0xff]   ;;  %v2638_v45 = vld [vmem:[#allocation5 + $0x1c8] sm:$0xff]   ;;  %v2642_v49 = vld [vmem:[#allocation5 + $0x1d0] sm:$0xff]  }
  0x35   :  { %2339 = vmatpush3.bf16.msra.mxu0 %v2615_v14  ;;  %1705 = vmatprep.mubr.bf16.mxu1 %v69_v36  ;;  %v2639_v46 = vld [vmem:[#allocation5 + $0x108] sm:$0xff]   ;;  %v2643_v50 = vld [vmem:[#allocation5 + $0x110] sm:$0xff]   ;;  %v2645_v52 = vld [vmem:[#allocation5 + $0x158] sm:$0xff]  }
  0x36   :  { %2361 = vmatpush3.bf16.msra.mxu1 %v2616_v15  ;;  %2340 = vmatprep.subr.bf16.mxu0 %v2617_v16  ;;  %v2640_v47 = vld [vmem:[#allocation5 + $0x188] sm:$0xff]   ;;  %v2644_v51 = vld [vmem:[#allocation5 + $0x190] sm:$0xff]   ;;  %v2646_v53 = vld [vmem:[#allocation5 + $0x1d8] sm:$0xff]  }
  0x37   :  { %2362 = vmatprep.subr.bf16.mxu1 %v2618_v17  ;;  %v2647_v54 = vld [vmem:[#allocation5 + $0x118] sm:$0xff]   ;;  %v2649_v56 = vld [vmem:[#allocation5 + $0x160] sm:$0xff]   ;;  %v2653_v60 = vld [vmem:[#allocation5 + $0x168] sm:$0xff]  }
  0x38   :  { %v2648_v55 = vld [vmem:[#allocation5 + $0x198] sm:$0xff]   ;;  %v2650_v57 = vld [vmem:[#allocation5 + $0x1e0] sm:$0xff]   ;;  %v2654_v61 = vld [vmem:[#allocation5 + $0x1e8] sm:$0xff]  }
  0x39   :  { %2341 = vmatpush3.bf16.msra.mxu0 %v2619_v18  ;;  %v2651_v58 = vld [vmem:[#allocation5 + $0x120] sm:$0xff]   ;;  %v2655_v62 = vld [vmem:[#allocation5 + $0x128] sm:$0xff]   ;;  %v2657_v0 = vld [vmem:[#allocation5 + $0x170] sm:$0xff]  }
  0x3a   :  { %2363 = vmatpush3.bf16.msra.mxu1 %v2620_v19  ;;  %2342 = vmatprep.subr.bf16.mxu0 %v2621_v20  ;;  %v2652_v59 = vld [vmem:[#allocation5 + $0x1a0] sm:$0xff]   ;;  %v2656_v63 = vld [vmem:[#allocation5 + $0x1a8] sm:$0xff]   ;;  %v2658_v1 = vld [vmem:[#allocation5 + $0x1f0] sm:$0xff]  }
  0x3b   :  { %2364 = vmatprep.subr.bf16.mxu1 %v2622_v21  ;;  %v2659_v2 = vld [vmem:[#allocation5 + $0x130] sm:$0xff]   ;;  %v2661_v4 = vld [vmem:[#allocation5 + $0x178] sm:$0xff]   ;;  %v47_v8 = vld [vmem:[#allocation2 + $0x28] sm:$0xff] }
  0x3c   :  { %v2660_v3 = vld [vmem:[#allocation5 + $0x1b0] sm:$0xff]   ;;  %v2662_v5 = vld [vmem:[#allocation5 + $0x1f8] sm:$0xff]   ;;  %v71_v10 = vpack.c.bf16 %v47_v8, %v47_v8  ;;  %v46_v12 = vld [vmem:[#allocation2 + $0x20] sm:$0xff] }
  0x3d   :  { %2343 = vmatpush3.bf16.msra.mxu0 %v2623_v22  ;;  %v2663_v6 = vld [vmem:[#allocation5 + $0x138] sm:$0xff]   ;;  %v48_v13 = vld [vmem:[#allocation2 + $0x30] sm:$0xff]  ;;  %v70_v14 = vpack.c.bf16 %v46_v12, %v46_v12  ;;  %v2665_v16 = vld [vmem:[#allocation5 + $0x240] sm:$0xff]  }
  0x3e   :  { %2365 = vmatpush3.bf16.msra.mxu1 %v2624_v23  ;;  %2344 = vmatprep.subr.bf16.mxu0 %v2625_v24  ;;  %v2664_v7 = vld [vmem:[#allocation5 + $0x1b8] sm:$0xff]   ;;  %v72_v15 = vpack.c.bf16 %v48_v13, %v48_v13  ;;  %v2666_v17 = vld [vmem:[#allocation5 + $0x2c0] sm:$0xff]   ;;  %v2669_v20 = vld [vmem:[#allocation5 + $0x248] sm:$0xff]  }
  0x3f   :  { %2366 = vmatprep.subr.bf16.mxu1 %v2626_v25  ;;  %v49_v9 = vld [vmem:[#allocation2 + $0x38] sm:$0xff]  ;;  %v2667_v18 = vld [vmem:[#allocation5 + $0x200] sm:$0xff]   ;;  %v2670_v21 = vld [vmem:[#allocation5 + $0x2c8] sm:$0xff]  }
  0x40   :  { %v73_v11 = vpack.c.bf16 %v49_v9, %v49_v9  ;;  %v2668_v19 = vld [vmem:[#allocation5 + $0x280] sm:$0xff]   ;;  %v2671_v22 = vld [vmem:[#allocation5 + $0x208] sm:$0xff]   ;;  %v2673_v24 = vld [vmem:[#allocation5 + $0x250] sm:$0xff]  }
  0x41   :  { %2345 = vmatpush3.bf16.msra.mxu0 %v2627_v26  ;;  %v2672_v23 = vld [vmem:[#allocation5 + $0x288] sm:$0xff]   ;;  %v2674_v25 = vld [vmem:[#allocation5 + $0x2d0] sm:$0xff]   ;;  %v2681_v32 = vld [vmem:[#allocation5 + $0x260] sm:$0xff]  }
  0x42   :  { %2367 = vmatpush3.bf16.msra.mxu1 %v2628_v27  ;;  %2346 = vmatprep.subr.bf16.mxu0 %v2629_v28  ;;  %v2675_v26 = vld [vmem:[#allocation5 + $0x210] sm:$0xff]   ;;  %v2677_v28 = vld [vmem:[#allocation5 + $0x258] sm:$0xff]   ;;  %v2682_v33 = vld [vmem:[#allocation5 + $0x2e0] sm:$0xff]  }
  0x43   :  { %2368 = vmatprep.subr.bf16.mxu1 %v2630_v29  ;;  %v2676_v27 = vld [vmem:[#allocation5 + $0x290] sm:$0xff]   ;;  %v2678_v29 = vld [vmem:[#allocation5 + $0x2d8] sm:$0xff]   ;;  %v2683_v34 = vld [vmem:[#allocation5 + $0x220] sm:$0xff]  }
  0x44   :  { %v2684_v35 = vld [vmem:[#allocation5 + $0x2a0] sm:$0xff]   ;;  %v2685_v36 = vld [vmem:[#allocation5 + $0x268] sm:$0xff]  }
  0x45   :  { %2347 = vmatpush3.bf16.msra.mxu0 %v2631_v30  ;;  %v2679_v30 = vld [vmem:[#allocation5 + $0x218] sm:$0xff]   ;;  %v2687_v38 = vld [vmem:[#allocation5 + $0x228] sm:$0xff]   ;;  %v2713_v8 = vld [vmem:[#allocation5 + $0x360] sm:$0xff]  }
  0x46   :  { %2369 = vmatpush3.bf16.msra.mxu1 %v2632_v31  ;;  %2376 = vmatprep.subr.bf16.mxu0 %v2633_v40  ;;  %v2680_v31 = vld [vmem:[#allocation5 + $0x298] sm:$0xff]   ;;  %v2689_v40 = vld [vmem:[#allocation5 + $0x270] sm:$0xff]   ;;  %v2714_v9 = vld [vmem:[#allocation5 + $0x3e0] sm:$0xff]  }
  0x47   :  { %2398 = vmatprep.subr.bf16.mxu1 %v2634_v41  ;;  %v2690_v41 = vld [vmem:[#allocation5 + $0x2f0] sm:$0xff]   ;;  %v2717_v12 = vld [vmem:[#allocation5 + $0x368] sm:$0xff]  }
  0x48   :  { %1666 = vmatmul.mubr.bf16.vlgmr.msra.gmra.mrb[0].mxu0 %v66_v37  ;;  %v2686_v37 = vld [vmem:[#allocation5 + $0x2e8] sm:$0xff]  }
  0x49   :  { %1706 = vmatmul.mubr.bf16.vlgmr.msra.gmra.mrb[0].mxu1 %v68_v39  ;;  %2377 = vmatpush3.bf16.msra.mxu0 %v2635_v42  ;;  %v2688_v39 = vld [vmem:[#allocation5 + $0x2a8] sm:$0xff]   ;;  %v2691_v42 = vld [vmem:[#allocation5 + $0x230] sm:$0xff]  }
  0x4a   :  { %2399 = vmatpush3.bf16.msra.mxu1 %v2636_v43  ;;  %2378 = vmatprep.subr.bf16.mxu0 %v2637_v44  ;;  %v2692_v43 = vld [vmem:[#allocation5 + $0x2b0] sm:$0xff]   ;;  %v2693_v44 = vld [vmem:[#allocation5 + $0x278] sm:$0xff]   ;;  %v2718_v13 = vld [vmem:[#allocation5 + $0x3e8] sm:$0xff]  }
  0x4b   :  { %2400 = vmatprep.subr.bf16.mxu1 %v2638_v45  ;;  %1745 = vmatprep.mubr.bf16.mxu0 %v71_v10  ;;  %v2694_v45 = vld [vmem:[#allocation5 + $0x2f8] sm:$0xff]   ;;  %v2715_v10 = vld [vmem:[#allocation5 + $0x320] sm:$0xff]  }
  0x4c   :  { %1785 = vmatprep.mubr.bf16.mxu1 %v73_v11  ;;  %v2716_v11 = vld [vmem:[#allocation5 + $0x3a0] sm:$0xff]  }
  0x4d   :  { %2379 = vmatpush3.bf16.msra.mxu0 %v2639_v46  ;;  %v2695_v46 = vld [vmem:[#allocation5 + $0x238] sm:$0xff]  }
  0x4e   :  { %2401 = vmatpush3.bf16.msra.mxu1 %v2640_v47  ;;  %2380 = vmatprep.subr.bf16.mxu0 %v2641_v48  ;;  %v2696_v47 = vld [vmem:[#allocation5 + $0x2b8] sm:$0xff]   ;;  %v51_v48 = vld [vmem:[#allocation2 + $0x48] sm:$0xff] }
  0x4f   :  { %2402 = vmatprep.subr.bf16.mxu1 %v2642_v49  ;;  %v75_v49 = vpack.c.bf16 %v51_v48, %v51_v48  ;;  %v2745_v48 = vld [vmem:[#allocation5 + $0x460] sm:$0xff]  }
  0x51   :  { %2381 = vmatpush3.bf16.msra.mxu0 %v2643_v50  ;;  %v53_v50 = vld [vmem:[#allocation2 + $0x58] sm:$0xff] }
  0x52   :  { %2403 = vmatpush3.bf16.msra.mxu1 %v2644_v51  ;;  %2382 = vmatprep.subr.bf16.mxu0 %v2645_v52  ;;  %v50_v51 = vld [vmem:[#allocation2 + $0x40] sm:$0xff]  ;;  %v52_v52 = vld [vmem:[#allocation2 + $0x50] sm:$0xff] }
  0x53   :  { %2404 = vmatprep.subr.bf16.mxu1 %v2646_v53  ;;  %v77_v53 = vpack.c.bf16 %v53_v50, %v53_v50  ;;  %v2747_v50 = vld [vmem:[#allocation5 + $0x420] sm:$0xff]  }
  0x55   :  { %2383 = vmatpush3.bf16.msra.mxu0 %v2647_v54  ;;  %v74_v54 = vpack.c.bf16 %v50_v51, %v50_v51  ;;  %v2748_v51 = vld [vmem:[#allocation5 + $0x4a0] sm:$0xff]  }
  0x56   :  { %2405 = vmatpush3.bf16.msra.mxu1 %v2648_v55  ;;  %2384 = vmatprep.subr.bf16.mxu0 %v2649_v56  ;;  %v76_v55 = vpack.c.bf16 %v52_v52, %v52_v52  ;;  %v2697_v56 = vld [vmem:[#allocation5 + $0x340] sm:$0xff]   ;;  %v2749_v52 = vld [vmem:[#allocation5 + $0x468] sm:$0xff]  }
  0x57   :  { %2406 = vmatprep.subr.bf16.mxu1 %v2650_v57  ;;  %v2698_v57 = vld [vmem:[#allocation5 + $0x3c0] sm:$0xff]  }
  0x59   :  { %2385 = vmatpush3.bf16.msra.mxu0 %v2651_v58  ;;  %v2699_v58 = vld [vmem:[#allocation5 + $0x300] sm:$0xff]  }
  0x5a   :  { %2407 = vmatpush3.bf16.msra.mxu1 %v2652_v59  ;;  %2386 = vmatprep.subr.bf16.mxu0 %v2653_v60  ;;  %v2700_v59 = vld [vmem:[#allocation5 + $0x380] sm:$0xff]   ;;  %v2701_v60 = vld [vmem:[#allocation5 + $0x348] sm:$0xff]  }
  0x5b   :  { %2408 = vmatprep.subr.bf16.mxu1 %v2654_v61  ;;  %v2702_v61 = vld [vmem:[#allocation5 + $0x3c8] sm:$0xff]  }
  0x5d   :  { %2387 = vmatpush3.bf16.msra.mxu0 %v2655_v62  ;;  %v2703_v62 = vld [vmem:[#allocation5 + $0x308] sm:$0xff]  }
  0x5e   :  { %2409 = vmatpush3.bf16.msra.mxu1 %v2656_v63  ;;  %2388 = vmatprep.subr.bf16.mxu0 %v2657_v0  ;;  %v2704_v63 = vld [vmem:[#allocation5 + $0x388] sm:$0xff]   ;;  %v2705_v0 = vld [vmem:[#allocation5 + $0x350] sm:$0xff]  }
  0x5f   :  { %2410 = vmatprep.subr.bf16.mxu1 %v2658_v1  ;;  %v2706_v1 = vld [vmem:[#allocation5 + $0x3d0] sm:$0xff]  }
  0x61   :  { %2389 = vmatpush3.bf16.msra.mxu0 %v2659_v2  ;;  %v2707_v2 = vld [vmem:[#allocation5 + $0x310] sm:$0xff]  }
  0x62   :  { %2411 = vmatpush3.bf16.msra.mxu1 %v2660_v3  ;;  %2390 = vmatprep.subr.bf16.mxu0 %v2661_v4  ;;  %v2708_v3 = vld [vmem:[#allocation5 + $0x390] sm:$0xff]   ;;  %v2709_v4 = vld [vmem:[#allocation5 + $0x358] sm:$0xff]  }
  0x63   :  { %2412 = vmatprep.subr.bf16.mxu1 %v2662_v5  ;;  %v2710_v5 = vld [vmem:[#allocation5 + $0x3d8] sm:$0xff]  }
  0x65   :  { %2391 = vmatpush3.bf16.msra.mxu0 %v2663_v6  ;;  %v2711_v6 = vld [vmem:[#allocation5 + $0x318] sm:$0xff]  }
  0x66   :  { %2413 = vmatpush3.bf16.msra.mxu1 %v2664_v7  ;;  %2420 = vmatprep.subr.bf16.mxu0 %v2665_v16  ;;  %v2712_v7 = vld [vmem:[#allocation5 + $0x398] sm:$0xff]   ;;  %v2721_v16 = vld [vmem:[#allocation5 + $0x370] sm:$0xff]  }
  0x67   :  { %2442 = vmatprep.subr.bf16.mxu1 %v2666_v17  ;;  %v2722_v17 = vld [vmem:[#allocation5 + $0x3f0] sm:$0xff]  }
  0x68   :  { %1746 = vmatmul.mubr.bf16.vlgmr.msra.gmra.mrb[4].mxu0 %v70_v14  ;;  %v2719_v14 = vld [vmem:[#allocation5 + $0x328] sm:$0xff]  }
  0x69   :  { %1786 = vmatmul.mubr.bf16.vlgmr.msra.gmra.mrb[4].mxu1 %v72_v15  ;;  %2421 = vmatpush3.bf16.msra.mxu0 %v2667_v18  ;;  %v2720_v15 = vld [vmem:[#allocation5 + $0x3a8] sm:$0xff]   ;;  %v2723_v18 = vld [vmem:[#allocation5 + $0x330] sm:$0xff]  }
  0x6a   :  { %2443 = vmatpush3.bf16.msra.mxu1 %v2668_v19  ;;  %2422 = vmatprep.subr.bf16.mxu0 %v2669_v20  ;;  %v2724_v19 = vld [vmem:[#allocation5 + $0x3b0] sm:$0xff]   ;;  %v2725_v20 = vld [vmem:[#allocation5 + $0x378] sm:$0xff]  }
  0x6b   :  { %2444 = vmatprep.subr.bf16.mxu1 %v2670_v21  ;;  %1825 = vmatprep.mubr.bf16.mxu0 %v75_v49  ;;  %v2726_v21 = vld [vmem:[#allocation5 + $0x3f8] sm:$0xff]   ;;  %v2746_v49 = vld [vmem:[#allocation5 + $0x4e0] sm:$0xff]  }
  0x6c   :  { %1865 = vmatprep.mubr.bf16.mxu1 %v77_v53  ;;  %v2750_v53 = vld [vmem:[#allocation5 + $0x4e8] sm:$0xff]  }
  0x6d   :  { %2423 = vmatpush3.bf16.msra.mxu0 %v2671_v22  ;;  %v2727_v22 = vld [vmem:[#allocation5 + $0x338] sm:$0xff]  }
  0x6e   :  { %2445 = vmatpush3.bf16.msra.mxu1 %v2672_v23  ;;  %2424 = vmatprep.subr.bf16.mxu0 %v2673_v24  ;;  %v2728_v23 = vld [vmem:[#allocation5 + $0x3b8] sm:$0xff]   ;;  %v55_v24 = vld [vmem:[#allocation2 + $0x68] sm:$0xff] }
  0x6f   :  { %2446 = vmatprep.subr.bf16.mxu1 %v2674_v25  ;;  %v57_v25 = vld [vmem:[#allocation2 + $0x78] sm:$0xff] }
  0x71   :  { %2425 = vmatpush3.bf16.msra.mxu0 %v2675_v26  ;;  %v54_v26 = vld [vmem:[#allocation2 + $0x60] sm:$0xff] }
  0x72   :  { %2447 = vmatpush3.bf16.msra.mxu1 %v2676_v27  ;;  %2426 = vmatprep.subr.bf16.mxu0 %v2677_v28  ;;  %v79_v27 = vpack.c.bf16 %v55_v24, %v55_v24  ;;  %v81_v28 = vpack.c.bf16 %v57_v25, %v57_v25  ;;  %v2777_v24 = vld [vmem:[#allocation5 + $0x560] sm:$0xff]  }
  0x73   :  { %2448 = vmatprep.subr.bf16.mxu1 %v2678_v29  ;;  %v78_v29 = vpack.c.bf16 %v54_v26, %v54_v26  ;;  %v2778_v25 = vld [vmem:[#allocation5 + $0x5e0] sm:$0xff]  }
  0x74   :  { %v2779_v26 = vld [vmem:[#allocation5 + $0x520] sm:$0xff]  }
  0x75   :  { %2427 = vmatpush3.bf16.msra.mxu0 %v2679_v30  ;;  %v56_v30 = vld [vmem:[#allocation2 + $0x70] sm:$0xff] }
  0x76   :  { %2449 = vmatpush3.bf16.msra.mxu1 %v2680_v31  ;;  %2428 = vmatprep.subr.bf16.mxu0 %v2681_v32  ;;  %v80_v31 = vpack.c.bf16 %v56_v30, %v56_v30  ;;  %v2729_v32 = vld [vmem:[#allocation5 + $0x440] sm:$0xff]   ;;  %v2783_v30 = vld [vmem:[#allocation5 + $0x528] sm:$0xff]  }
  0x77   :  { %2450 = vmatprep.subr.bf16.mxu1 %v2682_v33  ;;  %v2730_v33 = vld [vmem:[#allocation5 + $0x4c0] sm:$0xff]  }
  0x79   :  { %2429 = vmatpush3.bf16.msra.mxu0 %v2683_v34  ;;  %v2731_v34 = vld [vmem:[#allocation5 + $0x400] sm:$0xff]  }
  0x7a   :  { %2451 = vmatpush3.bf16.msra.mxu1 %v2684_v35  ;;  %2430 = vmatprep.subr.bf16.mxu0 %v2685_v36  ;;  %v2732_v35 = vld [vmem:[#allocation5 + $0x480] sm:$0xff]   ;;  %v2733_v36 = vld [vmem:[#allocation5 + $0x448] sm:$0xff]  }
  0x7b   :  { %2452 = vmatprep.subr.bf16.mxu1 %v2686_v37  ;;  %v2734_v37 = vld [vmem:[#allocation5 + $0x4c8] sm:$0xff]  }
  0x7d   :  { %2431 = vmatpush3.bf16.msra.mxu0 %v2687_v38  ;;  %v2735_v38 = vld [vmem:[#allocation5 + $0x408] sm:$0xff]  }
  0x7e   :  { %2453 = vmatpush3.bf16.msra.mxu1 %v2688_v39  ;;  %2432 = vmatprep.subr.bf16.mxu0 %v2689_v40  ;;  %v2736_v39 = vld [vmem:[#allocation5 + $0x488] sm:$0xff]   ;;  %v2737_v40 = vld [vmem:[#allocation5 + $0x450] sm:$0xff]  }
  0x7f   :  { %2454 = vmatprep.subr.bf16.mxu1 %v2690_v41  ;;  %v2738_v41 = vld [vmem:[#allocation5 + $0x4d0] sm:$0xff]  }
  0x81   :  { %2433 = vmatpush3.bf16.msra.mxu0 %v2691_v42  ;;  %v2739_v42 = vld [vmem:[#allocation5 + $0x410] sm:$0xff]  }
  0x82   :  { %2455 = vmatpush3.bf16.msra.mxu1 %v2692_v43  ;;  %2434 = vmatprep.subr.bf16.mxu0 %v2693_v44  ;;  %v2740_v43 = vld [vmem:[#allocation5 + $0x490] sm:$0xff]   ;;  %v2741_v44 = vld [vmem:[#allocation5 + $0x458] sm:$0xff]  }
  0x83   :  { %2456 = vmatprep.subr.bf16.mxu1 %v2694_v45  ;;  %v2742_v45 = vld [vmem:[#allocation5 + $0x4d8] sm:$0xff]  }
  0x85   :  { %2435 = vmatpush3.bf16.msra.mxu0 %v2695_v46  ;;  %v2743_v46 = vld [vmem:[#allocation5 + $0x418] sm:$0xff]  }
  0x86   :  { %2457 = vmatpush3.bf16.msra.mxu1 %v2696_v47  ;;  %2464 = vmatprep.subr.bf16.mxu0 %v2697_v56  ;;  %v2744_v47 = vld [vmem:[#allocation5 + $0x498] sm:$0xff]   ;;  %v2753_v56 = vld [vmem:[#allocation5 + $0x470] sm:$0xff]  }
  0x87   :  { %2486 = vmatprep.subr.bf16.mxu1 %v2698_v57  ;;  %v2754_v57 = vld [vmem:[#allocation5 + $0x4f0] sm:$0xff]  }
  0x88   :  { %1826 = vmatmul.mubr.bf16.vlgmr.msra.gmra.mrb[8].mxu0 %v74_v54  ;;  %v2751_v54 = vld [vmem:[#allocation5 + $0x428] sm:$0xff]  }
  0x89   :  { %1866 = vmatmul.mubr.bf16.vlgmr.msra.gmra.mrb[8].mxu1 %v76_v55  ;;  %2465 = vmatpush3.bf16.msra.mxu0 %v2699_v58  ;;  %v2752_v55 = vld [vmem:[#allocation5 + $0x4a8] sm:$0xff]   ;;  %v2755_v58 = vld [vmem:[#allocation5 + $0x430] sm:$0xff]  }
  0x8a   :  { %2487 = vmatpush3.bf16.msra.mxu1 %v2700_v59  ;;  %2466 = vmatprep.subr.bf16.mxu0 %v2701_v60  ;;  %v2756_v59 = vld [vmem:[#allocation5 + $0x4b0] sm:$0xff]   ;;  %v2757_v60 = vld [vmem:[#allocation5 + $0x478] sm:$0xff]  }
  0x8b   :  { %2488 = vmatprep.subr.bf16.mxu1 %v2702_v61  ;;  %1905 = vmatprep.mubr.bf16.mxu0 %v79_v27  ;;  %v2758_v61 = vld [vmem:[#allocation5 + $0x4f8] sm:$0xff]   ;;  %v2780_v27 = vld [vmem:[#allocation5 + $0x5a0] sm:$0xff]  }
  0x8c   :  { %1945 = vmatprep.mubr.bf16.mxu1 %v81_v28  ;;  %v2781_v28 = vld [vmem:[#allocation5 + $0x568] sm:$0xff]  }
  0x8d   :  { %2467 = vmatpush3.bf16.msra.mxu0 %v2703_v62  ;;  %v2759_v62 = vld [vmem:[#allocation5 + $0x438] sm:$0xff]  }
  0x8e   :  { %2489 = vmatpush3.bf16.msra.mxu1 %v2704_v63  ;;  %2468 = vmatprep.subr.bf16.mxu0 %v2705_v0  ;;  %v2760_v63 = vld [vmem:[#allocation5 + $0x4b8] sm:$0xff]   ;;  %v59_v0 = vld [vmem:[#allocation2 + $0x88] sm:$0xff] }
  0x8f   :  { %2490 = vmatprep.subr.bf16.mxu1 %v2706_v1  ;;  %v61_v1 = vld [vmem:[#allocation2 + $0x98] sm:$0xff] }
  0x91   :  { %2469 = vmatpush3.bf16.msra.mxu0 %v2707_v2  ;;  %v83_v2 = vpack.c.bf16 %v59_v0, %v59_v0 }
  0x92   :  { %2491 = vmatpush3.bf16.msra.mxu1 %v2708_v3  ;;  %2470 = vmatprep.subr.bf16.mxu0 %v2709_v4  ;;  %v85_v3 = vpack.c.bf16 %v61_v1, %v61_v1  ;;  %v58_v4 = vld [vmem:[#allocation2 + $0x80] sm:$0xff] }
  0x93   :  { %2492 = vmatprep.subr.bf16.mxu1 %v2710_v5  ;;  %v60_v5 = vld [vmem:[#allocation2 + $0x90] sm:$0xff] }
  0x95   :  { %2471 = vmatpush3.bf16.msra.mxu0 %v2711_v6  ;;  %v82_v6 = vpack.c.bf16 %v58_v4, %v58_v4 }
  0x96   :  { %2493 = vmatpush3.bf16.msra.mxu1 %v2712_v7  ;;  %2472 = vmatprep.subr.bf16.mxu0 %v2713_v8  ;;  %v84_v7 = vpack.c.bf16 %v60_v5, %v60_v5  ;;  %v2761_v8 = vld [vmem:[#allocation5 + $0x540] sm:$0xff]  }
  0x97   :  { %2494 = vmatprep.subr.bf16.mxu1 %v2714_v9  ;;  %v2762_v9 = vld [vmem:[#allocation5 + $0x5c0] sm:$0xff]  }
  0x99   :  { %2473 = vmatpush3.bf16.msra.mxu0 %v2715_v10  ;;  %v2763_v10 = vld [vmem:[#allocation5 + $0x500] sm:$0xff]  }
  0x9a   :  { %2495 = vmatpush3.bf16.msra.mxu1 %v2716_v11  ;;  %2474 = vmatprep.subr.bf16.mxu0 %v2717_v12  ;;  %v2764_v11 = vld [vmem:[#allocation5 + $0x580] sm:$0xff]   ;;  %v2765_v12 = vld [vmem:[#allocation5 + $0x548] sm:$0xff]  }
  0x9b   :  { %2496 = vmatprep.subr.bf16.mxu1 %v2718_v13  ;;  %v2766_v13 = vld [vmem:[#allocation5 + $0x5c8] sm:$0xff]  }
  0x9d   :  { %2475 = vmatpush3.bf16.msra.mxu0 %v2719_v14  ;;  %v2767_v14 = vld [vmem:[#allocation5 + $0x508] sm:$0xff]  }
  0x9e   :  { %2497 = vmatpush3.bf16.msra.mxu1 %v2720_v15  ;;  %2476 = vmatprep.subr.bf16.mxu0 %v2721_v16  ;;  %v2768_v15 = vld [vmem:[#allocation5 + $0x588] sm:$0xff]   ;;  %v2769_v16 = vld [vmem:[#allocation5 + $0x550] sm:$0xff]  }
  0x9f   :  { %2498 = vmatprep.subr.bf16.mxu1 %v2722_v17  ;;  %v2770_v17 = vld [vmem:[#allocation5 + $0x5d0] sm:$0xff]  }
  0xa1   :  { %2477 = vmatpush3.bf16.msra.mxu0 %v2723_v18  ;;  %v2771_v18 = vld [vmem:[#allocation5 + $0x510] sm:$0xff]  }
  0xa2   :  { %2499 = vmatpush3.bf16.msra.mxu1 %v2724_v19  ;;  %2478 = vmatprep.subr.bf16.mxu0 %v2725_v20  ;;  %v2772_v19 = vld [vmem:[#allocation5 + $0x590] sm:$0xff]   ;;  %v2773_v20 = vld [vmem:[#allocation5 + $0x558] sm:$0xff]  }
  0xa3   :  { %2500 = vmatprep.subr.bf16.mxu1 %v2726_v21  ;;  %v2774_v21 = vld [vmem:[#allocation5 + $0x5d8] sm:$0xff]  }
  0xa5   :  { %2479 = vmatpush3.bf16.msra.mxu0 %v2727_v22  ;;  %v2775_v22 = vld [vmem:[#allocation5 + $0x518] sm:$0xff]  }
  0xa6   :  { %2501 = vmatpush3.bf16.msra.mxu1 %v2728_v23  ;;  %2508 = vmatprep.subr.bf16.mxu0 %v2729_v32  ;;  %v2776_v23 = vld [vmem:[#allocation5 + $0x598] sm:$0xff]   ;;  %v2785_v32 = vld [vmem:[#allocation5 + $0x570] sm:$0xff]  }
  0xa7   :  { %2530 = vmatprep.subr.bf16.mxu1 %v2730_v33  ;;  %v2786_v33 = vld [vmem:[#allocation5 + $0x5f0] sm:$0xff]  }
  0xa8   :  { %1906 = vmatmul.mubr.bf16.vlgmr.msra.gmra.mrb[12].mxu0 %v78_v29  ;;  %v2782_v29 = vld [vmem:[#allocation5 + $0x5e8] sm:$0xff]  }
  0xa9   :  { %1946 = vmatmul.mubr.bf16.vlgmr.msra.gmra.mrb[12].mxu1 %v80_v31  ;;  %2509 = vmatpush3.bf16.msra.mxu0 %v2731_v34  ;;  %v2784_v31 = vld [vmem:[#allocation5 + $0x5a8] sm:$0xff]   ;;  %v2787_v34 = vld [vmem:[#allocation5 + $0x530] sm:$0xff]  }
  0xaa   :  { %2531 = vmatpush3.bf16.msra.mxu1 %v2732_v35  ;;  %2510 = vmatprep.subr.bf16.mxu0 %v2733_v36  ;;  %v2788_v35 = vld [vmem:[#allocation5 + $0x5b0] sm:$0xff]   ;;  %v2789_v36 = vld [vmem:[#allocation5 + $0x578] sm:$0xff]  }
  0xab   :  { %2532 = vmatprep.subr.bf16.mxu1 %v2734_v37  ;;  %1985 = vmatprep.mubr.bf16.mxu0 %v83_v2  ;;  %v2790_v37 = vld [vmem:[#allocation5 + $0x5f8] sm:$0xff]  }
  0xac   :  { %2025 = vmatprep.mubr.bf16.mxu1 %v85_v3 }
  0xad   :  { %2511 = vmatpush3.bf16.msra.mxu0 %v2735_v38  ;;  %v2791_v38 = vld [vmem:[#allocation5 + $0x538] sm:$0xff]  }
  0xae   :  { %2533 = vmatpush3.bf16.msra.mxu1 %v2736_v39  ;;  %2512 = vmatprep.subr.bf16.mxu0 %v2737_v40  ;;  %v2792_v39 = vld [vmem:[#allocation5 + $0x5b8] sm:$0xff]   ;;  %v63_v40 = vld [vmem:[#allocation2 + $0xa8] sm:$0xff] }
  0xaf   :  { %2534 = vmatprep.subr.bf16.mxu1 %v2738_v41  ;;  %v87_v41 = vpack.c.bf16 %v63_v40, %v63_v40 }
  0xb1   :  { %2513 = vmatpush3.bf16.msra.mxu0 %v2739_v42  ;;  %v65_v42 = vld [vmem:[#allocation2 + $0xb8] sm:$0xff] }
  0xb2   :  { %2535 = vmatpush3.bf16.msra.mxu1 %v2740_v43  ;;  %2514 = vmatprep.subr.bf16.mxu0 %v2741_v44  ;;  %v62_v43 = vld [vmem:[#allocation2 + $0xa0] sm:$0xff]  ;;  %v64_v44 = vld [vmem:[#allocation2 + $0xb0] sm:$0xff] }
  0xb3   :  { %2536 = vmatprep.subr.bf16.mxu1 %v2742_v45  ;;  %v89_v45 = vpack.c.bf16 %v65_v42, %v65_v42 }
  0xb5   :  { %2515 = vmatpush3.bf16.msra.mxu0 %v2743_v46  ;;  %v86_v46 = vpack.c.bf16 %v62_v43, %v62_v43 }
  0xb6   :  { %2537 = vmatpush3.bf16.msra.mxu1 %v2744_v47  ;;  %2516 = vmatprep.subr.bf16.mxu0 %v2745_v48  ;;  %v88_v47 = vpack.c.bf16 %v64_v44, %v64_v44 }
  0xb7   :  { %2538 = vmatprep.subr.bf16.mxu1 %v2746_v49 }
  0xb9   :  { %2517 = vmatpush3.bf16.msra.mxu0 %v2747_v50  ;;  %v2139_v50 = vld [vmem:[%s2942_s2] ss:$0 sm:$0xff]  ;;  %s2873_s2 = smov [#allocation7]  }
  0xba   :  { %2539 = vmatpush3.bf16.msra.mxu1 %v2748_v51  ;;  %2518 = vmatprep.subr.bf16.mxu0 %v2749_v52  ;;  %s2129_s11 = sshll.u32 %s2873_s2, 4  ;;  %s2130_s11 = int_to_ptr.vmem [resolvable:$true] %s2129_s11 }
  0xbb   :  { %2540 = vmatprep.subr.bf16.mxu1 %v2750_v53  ;;  %s2841_s12 = scalar_lea.vmem %s2130_s11, 128  ;;  %p2846_p3 = scmp.lt.s32.totalorder %s2130_s11, %s2130_s11 }
  0xbc   :  { %p2842_p2 = scmp.ne.s32.totalorder %s2130_s11, %s2841_s12  ;;  %p2847_p4 = scmp.lt.s32.totalorder %s2841_s12, %s2841_s12 }
  0xbd   :  { %2519 = vmatpush3.bf16.msra.mxu0 %v2751_v54 }
  0xbe   :  { %2541 = vmatpush3.bf16.msra.mxu1 %v2752_v55  ;;  %2520 = vmatprep.subr.bf16.mxu0 %v2753_v56  ;;  %p2848_p5 = por %p2847_p4, %p2846_p3 }
  0xbf   :  { %2542 = vmatprep.subr.bf16.mxu1 %v2754_v57 }
  0xc0   :  { %p2849_p6 = pnand %p2848_p5, %p2842_p2 }
  0xc1   :  { %2521 = vmatpush3.bf16.msra.mxu0 %v2755_v58 }
  0xc2   :  { %2543 = vmatpush3.bf16.msra.mxu1 %v2756_v59  ;;  %2522 = vmatprep.subr.bf16.mxu0 %v2757_v60 }
  0xc3   :  { %2544 = vmatprep.subr.bf16.mxu1 %v2758_v61 }
  0xc5   :  { %2523 = vmatpush3.bf16.msra.mxu0 %v2759_v62 }
  0xc6   :  { %2545 = vmatpush3.bf16.msra.mxu1 %v2760_v63  ;;  %2552 = vmatprep.subr.bf16.mxu0 %v2761_v8 }
  0xc7   :  { %2574 = vmatprep.subr.bf16.mxu1 %v2762_v9 }
  0xc8   :  { %1986 = vmatmul.mubr.bf16.vlgmr.msra.gmra.mrb[16].mxu0 %v82_v6 }
  0xc9   :  { %2026 = vmatmul.mubr.bf16.vlgmr.msra.gmra.mrb[16].mxu1 %v84_v7  ;;  %2553 = vmatpush3.bf16.msra.mxu0 %v2763_v10 }
  0xca   :  { %2575 = vmatpush3.bf16.msra.mxu1 %v2764_v11  ;;  %2554 = vmatprep.subr.bf16.mxu0 %v2765_v12 }
  0xcb   :  { %2576 = vmatprep.subr.bf16.mxu1 %v2766_v13  ;;  %2065 = vmatprep.mubr.bf16.mxu0 %v87_v41 }
  0xcc   :  { %2105 = vmatprep.mubr.bf16.mxu1 %v89_v45 }
  0xcd   :  { %2555 = vmatpush3.bf16.msra.mxu0 %v2767_v14 }
  0xce   :  { %2577 = vmatpush3.bf16.msra.mxu1 %v2768_v15  ;;  %2556 = vmatprep.subr.bf16.mxu0 %v2769_v16 }
  0xcf   :  { %2578 = vmatprep.subr.bf16.mxu1 %v2770_v17 }
  0xd1   :  { %2557 = vmatpush3.bf16.msra.mxu0 %v2771_v18 }
  0xd2   :  { %2579 = vmatpush3.bf16.msra.mxu1 %v2772_v19  ;;  %2558 = vmatprep.subr.bf16.mxu0 %v2773_v20 }
  0xd3   :  { %2580 = vmatprep.subr.bf16.mxu1 %v2774_v21 }
  0xd5   :  { %2559 = vmatpush3.bf16.msra.mxu0 %v2775_v22 }
  0xd6   :  { %2581 = vmatpush3.bf16.msra.mxu1 %v2776_v23  ;;  %2560 = vmatprep.subr.bf16.mxu0 %v2777_v24 }
  0xd7   :  { %2582 = vmatprep.subr.bf16.mxu1 %v2778_v25 }
  0xd9   :  { %2561 = vmatpush3.bf16.msra.mxu0 %v2779_v26 }
  0xda   :  { %2583 = vmatpush3.bf16.msra.mxu1 %v2780_v27  ;;  %2562 = vmatprep.subr.bf16.mxu0 %v2781_v28 }
  0xdb   :  { %2584 = vmatprep.subr.bf16.mxu1 %v2782_v29 }
  0xdd   :  { %2563 = vmatpush3.bf16.msra.mxu0 %v2783_v30 }
  0xde   :  { %2585 = vmatpush3.bf16.msra.mxu1 %v2784_v31  ;;  %2564 = vmatprep.subr.bf16.mxu0 %v2785_v32 }
  0xdf   :  { %2586 = vmatprep.subr.bf16.mxu1 %v2786_v33 }
  0xe1   :  { %2565 = vmatpush3.bf16.msra.mxu0 %v2787_v34 }
  0xe2   :  { %2587 = vmatpush3.bf16.msra.mxu1 %v2788_v35  ;;  %2566 = vmatprep.subr.bf16.mxu0 %v2789_v36 }
  0xe3   :  { %2588 = vmatprep.subr.bf16.mxu1 %v2790_v37 }
  0xe5   :  { %2567 = vmatpush3.bf16.msra.mxu0 %v2791_v38 }
  0xe6   :  { %2589 = vmatpush3.bf16.msra.mxu1 %v2792_v39 }
  0xe8   :  { %2066 = vmatmul.mubr.bf16.vlgmr.msra.gmra.mrb[20].mxu0 %v86_v46 }
  0xe9   :  { %2106 = vmatmul.mubr.bf16.vlgmr.msra.gmra.mrb[20].mxu1 %v88_v47 }
 0x11b   :  { %v2348_v48 = vpop.f32.mrb[0].mxu0 }
 0x11c   :  { %v2370_v49 = vpop.f32.mrb[0].mxu1  ;;  %v2349_v51 = vpop.f32.mrb[1].mxu0 }
 0x11d   :  { %v2371_v52 = vpop.f32.mrb[1].mxu1  ;;  %v2350_v53 = vadd.f32 %v2349_v51, %v2348_v48  ;;  %v2351_v55 = vpop.f32.mrb[2].mxu0 }
 0x11e   :  { %v2372_v54 = vadd.f32 %v2371_v52, %v2370_v49  ;;  %v2373_v56 = vpop.f32.mrb[2].mxu1  ;;  %v2352_v57 = vpop.f32.mrb[3].mxu0 }
 0x11f   :  { %v2374_v58 = vpop.f32.mrb[3].mxu1  ;;  %v1668_v59 = vadd.f32 %v2350_v53, %v2139_v50 }
 0x121   :  { %v1708_v60 = vadd.f32 %v2372_v54, %v1668_v59 }
 0x13b   :  { %v2392_v61 = vpop.f32.mrb[4].mxu0 }
 0x13c   :  { %v2414_v62 = vpop.f32.mrb[4].mxu1  ;;  %v2393_v63 = vpop.f32.mrb[5].mxu0 }
 0x13d   :  { %v2394_v0 = vadd.f32 %v2393_v63, %v2392_v61  ;;  %v2415_v1 = vpop.f32.mrb[5].mxu1  ;;  %v2395_v2 = vpop.f32.mrb[6].mxu0 }
 0x13e   :  { %v2416_v3 = vadd.f32 %v2415_v1, %v2414_v62  ;;  %v2417_v4 = vpop.f32.mrb[6].mxu1  ;;  %v2396_v5 = vpop.f32.mrb[7].mxu0 }
 0x13f   :  { %v1748_v6 = vadd.f32 %v2394_v0, %v1708_v60  ;;  %v2418_v7 = vpop.f32.mrb[7].mxu1 }
 0x141   :  { %v1788_v8 = vadd.f32 %v2416_v3, %v1748_v6 }
 0x15b   :  { %v2436_v9 = vpop.f32.mrb[8].mxu0 }
 0x15c   :  { %v2458_v10 = vpop.f32.mrb[8].mxu1  ;;  %v2437_v11 = vpop.f32.mrb[9].mxu0 }
 0x15d   :  { %v2438_v12 = vadd.f32 %v2437_v11, %v2436_v9  ;;  %v2459_v13 = vpop.f32.mrb[9].mxu1  ;;  %v2439_v14 = vpop.f32.mrb[10].mxu0 }
 0x15e   :  { %v2460_v15 = vadd.f32 %v2459_v13, %v2458_v10  ;;  %v2461_v16 = vpop.f32.mrb[10].mxu1  ;;  %v2440_v17 = vpop.f32.mrb[11].mxu0 }
 0x15f   :  { %v1828_v18 = vadd.f32 %v2438_v12, %v1788_v8  ;;  %v2462_v19 = vpop.f32.mrb[11].mxu1 }
 0x161   :  { %v1868_v20 = vadd.f32 %v2460_v15, %v1828_v18 }
 0x17b   :  { %v2480_v21 = vpop.f32.mrb[12].mxu0 }
 0x17c   :  { %v2502_v22 = vpop.f32.mrb[12].mxu1  ;;  %v2481_v23 = vpop.f32.mrb[13].mxu0 }
 0x17d   :  { %v2503_v24 = vpop.f32.mrb[13].mxu1  ;;  %v2482_v25 = vadd.f32 %v2481_v23, %v2480_v21  ;;  %v2483_v27 = vpop.f32.mrb[14].mxu0 }
 0x17e   :  { %v2504_v26 = vadd.f32 %v2503_v24, %v2502_v22  ;;  %v2505_v28 = vpop.f32.mrb[14].mxu1  ;;  %v2484_v29 = vpop.f32.mrb[15].mxu0 }
 0x17f   :  { %v2506_v30 = vpop.f32.mrb[15].mxu1  ;;  %v1908_v31 = vadd.f32 %v2482_v25, %v1868_v20 }
 0x181   :  { %v1948_v32 = vadd.f32 %v2504_v26, %v1908_v31 }
 0x19b   :  { %v2524_v33 = vpop.f32.mrb[16].mxu0 }
 0x19c   :  { %v2546_v34 = vpop.f32.mrb[16].mxu1  ;;  %v2525_v35 = vpop.f32.mrb[17].mxu0 }
 0x19d   :  { %v2526_v36 = vadd.f32 %v2525_v35, %v2524_v33  ;;  %v2547_v37 = vpop.f32.mrb[17].mxu1  ;;  %v2527_v38 = vpop.f32.mrb[18].mxu0 }
 0x19e   :  { %v2548_v39 = vadd.f32 %v2547_v37, %v2546_v34  ;;  %v2549_v40 = vpop.f32.mrb[18].mxu1  ;;  %v2528_v41 = vpop.f32.mrb[19].mxu0 }
 0x19f   :  { %v1988_v42 = vadd.f32 %v2526_v36, %v1948_v32  ;;  %v2550_v43 = vpop.f32.mrb[19].mxu1 }
 0x1a1   :  { %v2028_v44 = vadd.f32 %v2548_v39, %v1988_v42 }
 0x1bb   :  { %v2568_v45 = vpop.f32.mrb[20].mxu0 }
 0x1bc   :  { %v2590_v46 = vpop.f32.mrb[20].mxu1  ;;  %v2569_v47 = vpop.f32.mrb[21].mxu0 }
 0x1bd   :  { %v2570_v48 = vadd.f32 %v2569_v47, %v2568_v45  ;;  %v2591_v49 = vpop.f32.mrb[21].mxu1  ;;  %v2571_v50 = vpop.f32.mrb[22].mxu0 }
 0x1be   :  { %v2592_v51 = vadd.f32 %v2591_v49, %v2590_v46  ;;  %v2593_v52 = vpop.f32.mrb[22].mxu1  ;;  %v2572_v53 = vpop.f32.mrb[23].mxu0 }
 0x1bf   :  { %v2068_v54 = vadd.f32 %v2570_v48, %v2028_v44  ;;  %v2594_v55 = vpop.f32.mrb[23].mxu1 }
 0x1c1   :  { %v2108_v56 = vadd.f32 %v2592_v51, %v2068_v54 }
 0x1c3   :  { %2113 = vmax.xlane.f32.xlu0 %v2108_v56 }
 0x250   :  { %v2114_v57 = vpop.xlane.xlu0 %2113 }
 0x251   :  { %v2115_v58 = vsub.f32 %v2108_v56, %v2114_v57 }
 0x253   :  { %v2116_v59 = vmul.f32 1.442695, %v2115_v58 }
 0x255   :  { %2793 = vpow2.f32 %v2116_v59 }
 0x25f   :  { %v2794_v60 = vpop.eup %2793 }
 0x260   :  { %2118 = vadd.xlane.f32.xlu0 %v2794_v60 }
 0x2ed   :  { %v2119_v61 = vpop.xlane.xlu0 %2118 }
 0x2ee   :  { %2795 = vrcp.f32 %v2119_v61 }
 0x2f8   :  { %v2796_v62 = vpop.eup %2795 }
 0x2f9   :  { %v2121_v63 = vmul.f32 %v2796_v62, %v2794_v60 }
 0x2fb   :  { %2122 = vst [vmem:[#allocation7] sm:$0xff] %v2121_v63 }
 0x2fc   :  { %2852 = shalt.err (!%p2849_p6)
}
 0x2fd   :  { %s2853_s15 = scalar_lea.hbm %s2943_s3, 128 }
 0x2fe   :  { %p2854_p7 = scmp.ne.s32.totalorder %s2943_s3, %s2853_s15  ;;  %p2857_p8 = scmp.lt.u32.totalorder %s2853_s15, %s2943_s3 }
 0x300   :  { %p2859_p9 = pnand %p2857_p8, %p2854_p7 }
 0x302   :  { %2862 = shalt.err (!%p2859_p9)
}
 0x303   :  { %2132 = dma.vmem_to_hbm [thread:$0]  %s2130_s11, 128, %s2943_s3, [#allocation4]  }
 0x304   :  { %2867 = dma.done.wait [#allocation4], 128  }
 0x305   :  { %2868 = vsyncadd [#allocation4], 4294967168 }
 0x306   :  { %2136 = vsyncpa [#allocation3], 1 }
 0x307   :  { %2137 = vsyncpa [#allocation6], 1 }
 0x308   :  { %2138 = vsyncpa [#allocation4], 1 }

</bundles_post_ra>
